<compile_context>
chip_gen: v7x
topology: tpu7x:2x2x1
jax: 0.10.0
libtpu: 0.0.40
codegen_flags: <defaults>
</compile_context>

<pallas_src>
import jax
import jax.numpy as jnp
from jax.experimental import pallas as pl
from jax.experimental.pallas import tpu as pltpu


def attention_kernel(x_ref, mask_ref, w1_ref, b1_ref, w2_ref, b2_ref, out_ref):
    # x_ref:    (TB, Sp, Dp) f32        mask_ref: (TB, Sp) f32 {0,1}
    # w1_ref:   (Dp, Hp)                b1_ref:   (1, Hp)
    # w2_ref:   (1, Hp)  (row layout)   b2_ref:   (1, 1) in SMEM
    # out_ref:  (TB, 1, Dp)
    tb, sp, dp = x_ref.shape
    hp = w1_ref.shape[1]

    x3 = x_ref[...]                                   # (TB, Sp, Dp)
    x2 = x3.reshape(tb * sp, dp)                      # (TB*Sp, Dp)

    # Linear1 + tanh on the MXU: one big (TB*Sp, Dp) @ (Dp, Hp) matmul.
    m = jnp.tanh(
        jnp.dot(x2, w1_ref[...], preferred_element_type=jnp.float32)
        + b1_ref[...]                                 # (1, Hp) broadcasts over rows
    )                                                 # (TB*Sp, Hp)

    # Linear2 -> lane-dense logits (TB, Sp): multiply by w2 row, reduce over Hp lanes.
    m3 = m.reshape(tb, sp, hp)                        # (TB, Sp, Hp)
    w2row = w2_ref[...].reshape(1, 1, hp)             # (1, 1, Hp)
    logits = jnp.sum(m3 * w2row, axis=-1) + b2_ref[0, 0]   # (TB, Sp)

    # Masked softmax over the sequence (lane) axis.
    maskf = mask_ref[...]                             # (TB, Sp)
    logits = logits + (maskf - 1.0) * 1e30            # masked -> huge negative (finite)
    mx = jnp.max(logits, axis=-1, keepdims=True)      # (TB, 1)
    e = jnp.exp(logits - mx) * maskf                  # masked entries exactly 0
    denom = jnp.sum(e, axis=-1, keepdims=True)        # (TB, 1)
    score = e * pl.reciprocal(denom, approx=False)    # (TB, Sp)

    # Weighted sum over S on the MXU: (TB,1,Sp) @ (TB,Sp,Dp) -> (TB,1,Dp).
    out_ref[...] = jnp.einsum(
        "bqs,bsd->bqd", score[:, None, :], x3,
        preferred_element_type=jnp.float32,
    )


def _round_up(v, m):
    return -(-v // m) * m


def _choose_batch_tile(B, Sp, rows_target=256):
    # Aim for >= rows_target rows of the flattened (TB*Sp, Dp) MXU operand.
    tb = max(1, rows_target // Sp)
    if tb >= B:
        return B                          # whole batch in a single grid step
    return max(8, (tb // 8) * 8)          # TB multiple of 8 (sublane rule) otherwise


def attention_forward(x, mask, w1, b1, w2, b2):
    """x: (B,S,D) f32, mask: (B,S) bool, w1: (D,H), b1: (1,H), w2: (H,1), b2: (1,1)."""
    B, S, D = x.shape
    H = w1.shape[1]

    Sp = _round_up(S, 8)
    Dp = _round_up(D, 128)
    Hp = _round_up(H, 128)
    TB = _choose_batch_tile(B, Sp)
    B_pad = _round_up(B, TB)
    # Note: for very large S*D (e.g. v7x's 64 MiB VMEM), cap TB by a VMEM budget
    # or tile S with an online-softmax accumulator; unnecessary at these sizes.

    # Zero padding is exact (padded rows/cols contribute 0 through every op).
    x_pad = jnp.zeros((B_pad, Sp, Dp), jnp.float32).at[:B, :S, :D].set(
        x.astype(jnp.float32))
    maskf = jnp.zeros((B_pad, Sp), jnp.float32).at[:B, :S].set(
        mask.astype(jnp.float32))
    if B_pad > B:
        maskf = maskf.at[B:, 0].set(1.0)  # keep softmax finite in padded batch rows
    w1_pad = jnp.zeros((Dp, Hp), jnp.float32).at[:D, :H].set(w1.astype(jnp.float32))
    b1_pad = jnp.zeros((1, Hp), jnp.float32).at[:, :H].set(
        b1.reshape(1, H).astype(jnp.float32))
    w2_row = jnp.zeros((1, Hp), jnp.float32).at[:, :H].set(
        w2.reshape(1, H).astype(jnp.float32))
    b2_s = jnp.asarray(b2, jnp.float32).reshape(1, 1)

    out = pl.pallas_call(
        attention_kernel,
        out_shape=jax.ShapeDtypeStruct((B_pad, 1, Dp), jnp.float32),
        grid_spec=pltpu.PrefetchScalarGridSpec(
            num_scalar_prefetch=0,
            grid=(B_pad // TB,),
            in_specs=[
                pl.BlockSpec((TB, Sp, Dp), lambda b: (b, 0, 0)),   # X
                pl.BlockSpec((TB, Sp), lambda b: (b, 0)),          # mask
                pl.BlockSpec((Dp, Hp), lambda b: (0, 0)),          # W1
                pl.BlockSpec((1, Hp), lambda b: (0, 0)),           # b1
                pl.BlockSpec((1, Hp), lambda b: (0, 0)),           # w2 (row)
                pl.BlockSpec(memory_space=pltpu.MemorySpace.SMEM), # b2 scalar
            ],
            out_specs=pl.BlockSpec((TB, 1, Dp), lambda b: (b, 0, 0)),
        ),
        compiler_params=pltpu.CompilerParams(
            dimension_semantics=("parallel",),
        ),
    )(x_pad, maskf, w1_pad, b1_pad, w2_row, b2_s)

    return out.reshape(B_pad, Dp)[:B, :D]


def xavier_normal(key, fan_out, fan_in):
    # torch.nn.init.xavier_normal_: std = sqrt(2 / (fan_in + fan_out))
    std = jnp.sqrt(2.0 / (fan_in + fan_out))
    return jax.random.normal(key, (fan_out, fan_in), dtype=jnp.float32) * std


def reference_forward(x, mask, w1, b1, w2, b2):
    m = jnp.tanh(jnp.einsum("bsd,dh->bsh", x, w1) + b1)       # (B, S, H)
    logits = jnp.einsum("bsh,ho->bso", m, w2) + b2[0, 0]      # (B, S, 1)
    logits = jnp.where(mask[..., None], logits, -jnp.inf)
    score = jax.nn.softmax(logits, axis=1)
    return jnp.sum(score * x, axis=1)


if __name__ == "__main__":
    B, S, D, H = 2, 8, 32, 16          # batch, seq, input_size, hidden_size

    key = jax.random.PRNGKey(0)
    k_x, k_w1, k_b1, k_w2, k_b2, k_m = jax.random.split(key, 6)

    x = jax.random.normal(k_x, (B, S, D), dtype=jnp.float32)

    # Parameters (nn.Linear layout, stored pre-transposed for X @ W + b).
    w1_t = xavier_normal(k_w1, H, D)                                   # (H, D)
    b1 = jax.random.uniform(k_b1, (1, H), jnp.float32, -1.0, 1.0) / jnp.sqrt(D)
    w2_t = xavier_normal(k_w2, 1, H)                                   # (1, H)
    b2 = jax.random.uniform(k_b2, (1, 1), jnp.float32, -1.0, 1.0) / jnp.sqrt(H)
    w1 = w1_t.T                                                        # (D, H)
    w2 = w2_t.T                                                        # (H, 1)

    # Boolean mask: True = attend, False = masked out.
    mask = jax.random.uniform(k_m, (B, S)) > 0.3
    mask = mask.at[:, 0].set(True)     # at least one valid position per row

    out = attention_forward(x, mask, w1, b1, w2, b2)
    out = jax.block_until_ready(out)

    ref = reference_forward(x, mask, w1, b1, w2, b2)
    assert out.shape == (B, D)
    assert jnp.allclose(out, ref, atol=1e-5, rtol=1e-5), "mismatch vs JAX reference"

    print("KERNEL_OK")
</pallas_src>

<mosaic_0001>
module attributes {stable_mosaic.version = 11 : i64} {
  func.func @attention_kernel(%arg0: i32, %arg1: memref<2x8x128xf32, #tpu.memory_space<vmem>>, %arg2: memref<2x8xf32, #tpu.memory_space<vmem>>, %arg3: memref<128x128xf32, #tpu.memory_space<vmem>>, %arg4: memref<1x128xf32, #tpu.memory_space<vmem>>, %arg5: memref<1x128xf32, #tpu.memory_space<vmem>>, %arg6: memref<1x1xf32, #tpu.memory_space<smem>>, %arg7: memref<2x1x128xf32, #tpu.memory_space<vmem>>) attributes {dimension_semantics = [#tpu.dimension_semantics<parallel>], iteration_bounds = array<i64: 1>, scalar_prefetch = 0 : i64, scratch_operands = 0 : i64, tpu.core_type = #tpu.core_type<tc>, window_params = [{transform_indices = @transform_0, window_bounds = array<i64: 2, 8, 128>}, {transform_indices = @transform_1, window_bounds = array<i64: 2, 8>}, {pipeline_mode = #tpu.pipeline_mode<synchronous>, transform_indices = @transform_2, window_bounds = array<i64: 128, 128>}, {pipeline_mode = #tpu.pipeline_mode<synchronous>, transform_indices = @transform_3, window_bounds = array<i64: 1, 128>}, {pipeline_mode = #tpu.pipeline_mode<synchronous>, transform_indices = @transform_4, window_bounds = array<i64: 1, 128>}, {transform_indices = @transform_5, window_bounds = array<i64: 1, 1>}, {transform_indices = @transform_6, window_bounds = array<i64: 2, 1, 128>}]} {
    %c0 = arith.constant 0 : index
    %c0_0 = arith.constant 0 : index
    %c0_1 = arith.constant 0 : index
    %0 = vector.load %arg1[%c0, %c0_0, %c0_1] : memref<2x8x128xf32, #tpu.memory_space<vmem>>, vector<2x8x128xf32>
    %1 = vector.shape_cast %0 : vector<2x8x128xf32> to vector<16x128xf32>
    %c0_2 = arith.constant 0 : index
    %c0_3 = arith.constant 0 : index
    %2 = vector.load %arg3[%c0_2, %c0_3] : memref<128x128xf32, #tpu.memory_space<vmem>>, vector<128x128xf32>
    %cst = arith.constant dense<0.000000e+00> : vector<16x128xf32>
    %3 = tpu.matmul %1, %2, %cst {dimension_numbers = #tpu.dot_dimension_numbers<[1], [0], [0], [1], [0, 0, 1, 1], [], []>} : vector<16x128xf32>, vector<128x128xf32>, vector<16x128xf32> -> vector<16x128xf32>
    %c0_4 = arith.constant 0 : index
    %c0_5 = arith.constant 0 : index
    %4 = vector.load %arg4[%c0_4, %c0_5] : memref<1x128xf32, #tpu.memory_space<vmem>>, vector<1x128xf32>
    %5 = vector.broadcast %4 : vector<1x128xf32> to vector<16x128xf32>
    %6 = arith.addf %3, %5 : vector<16x128xf32>
    %7 = math.tanh %6 : vector<16x128xf32>
    %8 = vector.shape_cast %7 : vector<16x128xf32> to vector<2x8x128xf32>
    %c0_6 = arith.constant 0 : index
    %c0_7 = arith.constant 0 : index
    %9 = vector.load %arg5[%c0_6, %c0_7] : memref<1x128xf32, #tpu.memory_space<vmem>>, vector<1x128xf32>
    %10 = vector.shape_cast %9 : vector<1x128xf32> to vector<1x1x128xf32>
    %11 = vector.broadcast %10 : vector<1x1x128xf32> to vector<2x8x128xf32>
    %12 = arith.mulf %8, %11 : vector<2x8x128xf32>
    %cst_8 = arith.constant dense<0.000000e+00> : vector<2x8xf32>
    %13 = vector.multi_reduction <add>, %12, %cst_8 [2] : vector<2x8x128xf32> to vector<2x8xf32>
    %c0_9 = arith.constant 0 : index
    %c0_10 = arith.constant 0 : index
    %14 = memref.load %arg6[%c0_9, %c0_10] : memref<1x1xf32, #tpu.memory_space<smem>>
    %15 = vector.broadcast %14 : f32 to vector<2x8xf32>
    %16 = arith.addf %13, %15 : vector<2x8xf32>
    %c0_11 = arith.constant 0 : index
    %c0_12 = arith.constant 0 : index
    %17 = vector.load %arg2[%c0_11, %c0_12] : memref<2x8xf32, #tpu.memory_space<vmem>>, vector<2x8xf32>
    %cst_13 = arith.constant 1.000000e+00 : f32
    %18 = vector.broadcast %cst_13 : f32 to vector<2x8xf32>
    %19 = arith.subf %17, %18 : vector<2x8xf32>
    %cst_14 = arith.constant 1.000000e+30 : f32
    %20 = vector.broadcast %cst_14 : f32 to vector<2x8xf32>
    %21 = arith.mulf %19, %20 : vector<2x8xf32>
    %22 = arith.addf %16, %21 : vector<2x8xf32>
    %cst_15 = arith.constant dense<0xFF800000> : vector<2xf32>
    %23 = vector.multi_reduction <maximumf>, %22, %cst_15 [1] : vector<2x8xf32> to vector<2xf32>
    %24 = vector.shape_cast %23 : vector<2xf32> to vector<2x1xf32>
    %25 = vector.broadcast %24 : vector<2x1xf32> to vector<2x8xf32>
    %26 = arith.subf %22, %25 : vector<2x8xf32>
    %27 = math.exp %26 : vector<2x8xf32>
    %28 = arith.mulf %27, %17 : vector<2x8xf32>
    %cst_16 = arith.constant dense<0.000000e+00> : vector<2xf32>
    %29 = vector.multi_reduction <add>, %28, %cst_16 [1] : vector<2x8xf32> to vector<2xf32>
    %30 = vector.shape_cast %29 : vector<2xf32> to vector<2x1xf32>
    %31 = tpu.reciprocal %30 : vector<2x1xf32> -> vector<2x1xf32>
    %32 = vector.broadcast %31 : vector<2x1xf32> to vector<2x8xf32>
    %33 = arith.mulf %28, %32 : vector<2x8xf32>
    %34 = vector.shape_cast %33 : vector<2x8xf32> to vector<2x1x8xf32>
    "tpu.trace_start"() <{level = 10 : i32, message = "bqs,bsd->bqd"}> : () -> ()
    %cst_17 = arith.constant dense<0.000000e+00> : vector<2x1x128xf32>
    %35 = tpu.matmul %34, %0, %cst_17 {dimension_numbers = #tpu.dot_dimension_numbers<[2], [1], [1], [2], [0, 0, 0, 1, 1, 2], [0], [0]>} : vector<2x1x8xf32>, vector<2x8x128xf32>, vector<2x1x128xf32> -> vector<2x1x128xf32>
    "tpu.trace_stop"() : () -> ()
    %c0_18 = arith.constant 0 : index
    %c0_19 = arith.constant 0 : index
    %c0_20 = arith.constant 0 : index
    %36 = vector.load %arg7[%c0_18, %c0_19, %c0_20] : memref<2x1x128xf32, #tpu.memory_space<vmem>>, vector<2x1x128xf32>
    tpu.vector_store %arg7[%c0_18, %c0_19, %c0_20], %35 {strides = array<i32>} : memref<2x1x128xf32, #tpu.memory_space<vmem>>, vector<2x1x128xf32>,
    return
  }
  func.func @transform_0(%arg0: i32) -> (i32, i32, i32) {
    %c0_i32 = arith.constant 0 : i32
    %c0_i32_0 = arith.constant 0 : i32
    %c0_i32_1 = arith.constant 0 : i32
    return %arg0, %c0_i32, %c0_i32_0 : i32, i32, i32
  }
  func.func @transform_1(%arg0: i32) -> (i32, i32) {
    %c0_i32 = arith.constant 0 : i32
    %c0_i32_0 = arith.constant 0 : i32
    return %arg0, %c0_i32 : i32, i32
  }
  func.func @transform_2(%arg0: i32) -> (i32, i32) {
    %c0_i32 = arith.constant 0 : i32
    %c0_i32_0 = arith.constant 0 : i32
    %c0_i32_1 = arith.constant 0 : i32
    return %c0_i32, %c0_i32_0 : i32, i32
  }
  func.func @transform_3(%arg0: i32) -> (i32, i32) {
    %c0_i32 = arith.constant 0 : i32
    %c0_i32_0 = arith.constant 0 : i32
    %c0_i32_1 = arith.constant 0 : i32
    return %c0_i32, %c0_i32_0 : i32, i32
  }
  func.func @transform_4(%arg0: i32) -> (i32, i32) {
    %c0_i32 = arith.constant 0 : i32
    %c0_i32_0 = arith.constant 0 : i32
    %c0_i32_1 = arith.constant 0 : i32
    return %c0_i32, %c0_i32_0 : i32, i32
  }
  func.func @transform_5(%arg0: i32) -> (i32, i32) {
    %c0_i32 = arith.constant 0 : i32
    %c0_i32_0 = arith.constant 0 : i32
    %c0_i32_1 = arith.constant 0 : i32
    return %c0_i32, %c0_i32_0 : i32, i32
  }
  func.func @transform_6(%arg0: i32) -> (i32, i32, i32) {
    %c0_i32 = arith.constant 0 : i32
    %c0_i32_0 = arith.constant 0 : i32
    %c0_i32_1 = arith.constant 0 : i32
    return %arg0, %c0_i32, %c0_i32_0 : i32, i32, i32
  }
}

</mosaic_0001>

<bundles_post_ra>
// kernel: tpu_custom_call.1
= control target key start
LH: loop header
LB: loop body
LE: loop exit
PB: predicated region body
PF: predicated region fallthrough
CT: control target
= control target key end

     0   :  { %12 = vsyncpa [#allocation4], 0  ;;  %s794_s0 = inlined_call_operand.hbm [shape: f32[2,8,128], index: 0, kind: input, shape index: {}]   ;;  %s795_s1 = inlined_call_operand.vmem [shape: f32[2,8], index: 1, kind: input, shape index: {}]   ;;  %s796_s2 = inlined_call_operand.hbm [shape: f32[128,128], index: 2, kind: input, shape index: {}]   ;;  %s797_s3 = inlined_call_operand.vmem [shape: f32[1,128], index: 3, kind: input, shape index: {}]   ;;  %s798_s4 = inlined_call_operand.vmem [shape: f32[1,128], index: 4, kind: input, shape index: {}]   ;;  %s799_s5 = inlined_call_operand.<no memory space> [shape: f32[1,1], index: 5, kind: input, shape index: {}]   ;;  %s800_s6 = inlined_call_operand.hbm [shape: f32[2,1,128], index: 6, kind: output, shape index: {}]  }
   0x1   :  { %13 = vsyncpa [#allocation7], 0 }
   0x2   :  { %14 = vsyncpa [#allocation5], 0  ;;  %s669_s21 = smov [#allocation3]   ;;  %s597_s25 = scalar_lea.hbm %s794_s0, 256 }
   0x3   :  { %s20_s22 = sshll.u32 %s669_s21, 4  ;;  %p598_p0 = scmp.ne.s32.totalorder %s794_s0, %s597_s25  ;;  %s21_s22 = int_to_ptr.vmem [resolvable:$true] %s20_s22 }
   0x4   :  { %p601_p1 = scmp.lt.u32.totalorder %s597_s25, %s794_s0 }
   0x6   :  { %p603_p2 = pnand %p601_p1, %p598_p0 }
   0x8   :  { %606 = shalt.err (!%p603_p2)
}
   0x9   :  { %s607_s30 = scalar_lea.vmem %s21_s22, 256  ;;  %p612_p4 = scmp.lt.s32.totalorder %s21_s22, %s21_s22 }
   0xa   :  { %p608_p3 = scmp.ne.s32.totalorder %s21_s22, %s607_s30  ;;  %p613_p5 = scmp.lt.s32.totalorder %s607_s30, %s607_s30 }
   0xc   :  { %p614_p6 = por %p613_p5, %p612_p4 }
   0xe   :  { %p615_p7 = pnand %p614_p6, %p608_p3 }
  0x10   :  { %618 = shalt.err (!%p615_p7)
}
  0x11   :  { %s670_s7 = smov 128   ;;  %s671_s8 = smov 8  }
  0x12   :  { %26 = dma.hbm_to_vmem [thread:$0]  %s794_s0, 256, %s21_s22, [#allocation4], %s670_s7, %s670_s7, %s671_s8  }
  0x13   :  { %s672_s11 = smov [#allocation6]   ;;  %s619_s15 = scalar_lea.hbm %s796_s2, 2048 }
  0x14   :  { %s34_s12 = sshll.u32 %s672_s11, 4  ;;  %p620_p8 = scmp.ne.s32.totalorder %s796_s2, %s619_s15  ;;  %s35_s12 = int_to_ptr.vmem [resolvable:$true] %s34_s12 }
  0x15   :  { %p623_p9 = scmp.lt.u32.totalorder %s619_s15, %s796_s2 }
  0x17   :  { %p625_p10 = pnand %p623_p9, %p620_p8 }
  0x19   :  { %628 = shalt.err (!%p625_p10)
}
  0x1a   :  { %s629_s20 = scalar_lea.vmem %s35_s12, 2048  ;;  %p634_p12 = scmp.lt.s32.totalorder %s35_s12, %s35_s12 }
  0x1b   :  { %p630_p11 = scmp.ne.s32.totalorder %s35_s12, %s629_s20  ;;  %p635_p13 = scmp.lt.s32.totalorder %s629_s20, %s629_s20 }
  0x1d   :  { %p636_p0 = por %p635_p13, %p634_p12 }
  0x1f   :  { %p637_p1 = pnand %p636_p0, %p630_p11 }
  0x21   :  { %640 = shalt.err (!%p637_p1)
}
  0x22   :  { %40 = dma.hbm_to_vmem [thread:$0]  %s796_s2, 2048, %s35_s12, [#allocation7], %s670_s7, %s670_s7, %s671_s8  }
  0x23   :  { %663 = dma.done.wait [#allocation4], 256  }
  0x24   :  { %664 = vsyncadd [#allocation4], 4294967040 }
  0x25   :  { %665 = dma.done.wait [#allocation7], 2048  }
  0x26   :  { %666 = vsyncadd [#allocation7], 4294965248  ;;  %v55_v0 = vld [vmem:[#allocation6] sm:$0xff]  ;;  %v56_v1 = vld [vmem:[#allocation6 + $0x8] sm:$0xff]  ;;  %v176_v27 = vlaneseq  ;;  %v673_v47 = vmov 0   ;;  %v169_v48 = vstv %s799_s5  ;;  %vm212_vm0 = vcmask 1041409  }
  0x27   :  { %v57_v2 = vld [vmem:[#allocation6 + $0x10] sm:$0xff]  ;;  %v543_v3 = vpack.c.bf16 %v56_v1, %v55_v0  ;;  %v58_v4 = vld [vmem:[#allocation6 + $0x18] sm:$0xff]  ;;  %v59_v6 = vld [vmem:[#allocation6 + $0x20] sm:$0xff]  ;;  %585 = vset.pattern.permute.xlu0 %v673_v47  ;;  %586 = vset.pattern.permute.xlu1 %v673_v47  ;;  %vm215_vm1 = vcmask 58368   ;;  %vm675_vm2 = vmmov 0   ;;  %vm298_vm3 = vcmask 64512  }
  0x28   :  { %v547_v5 = vpack.c.bf16 %v58_v4, %v57_v2  ;;  %v60_v7 = vld [vmem:[#allocation6 + $0x28] sm:$0xff]  ;;  %v738_v9 = vld [vmem:[#allocation3] sm:$0xff]  ;;  %v62_v11 = vld [vmem:[#allocation6 + $0x38] sm:$0xff]  ;;  %v177_v29 = vshrl.u32 %v176_v27, 7  ;;  %v203_v30 = vand.u32 127, %v176_v27 }
  0x29   :  { %544 = vmatprep.subr.bf16.mxu0 %v543_v3  ;;  %v551_v8 = vpack.c.bf16 %v60_v7, %v59_v6  ;;  %v61_v10 = vld [vmem:[#allocation6 + $0x30] sm:$0xff]  ;;  %530 = vmatprep.mubr.f32.mxu0 %v738_v9  ;;  %v63_v13 = vld [vmem:[#allocation6 + $0x40] sm:$0xff]  ;;  %v64_v14 = vld [vmem:[#allocation6 + $0x48] sm:$0xff] }
  0x2a   :  { %546 = vmatpush3.bf16.msra.mxu0 %v543_v3  ;;  %v555_v12 = vpack.c.bf16 %v62_v11, %v61_v10  ;;  %v559_v15 = vpack.c.bf16 %v64_v14, %v63_v13  ;;  %v65_v16 = vld [vmem:[#allocation6 + $0x50] sm:$0xff]  ;;  %v66_v17 = vld [vmem:[#allocation6 + $0x58] sm:$0xff]  ;;  %v67_v19 = vld [vmem:[#allocation6 + $0x60] sm:$0xff]  ;;  %v747_v32 = vsub.s32 0, %v177_v29  ;;  %v749_v33 = vsub.s32 %v203_v30, %v177_v29 }
  0x2b   :  { %548 = vmatprep.subr.bf16.mxu0 %v547_v5  ;;  %v563_v18 = vpack.c.bf16 %v66_v17, %v65_v16  ;;  %v68_v20 = vld [vmem:[#allocation6 + $0x68] sm:$0xff]  ;;  %v69_v22 = vld [vmem:[#allocation6 + $0x70] sm:$0xff]  ;;  %v70_v23 = vld [vmem:[#allocation6 + $0x78] sm:$0xff]  ;;  %v751_v34 = vsub.s32 1, %v177_v29 }
  0x2c   :  { %v567_v21 = vpack.c.bf16 %v68_v20, %v67_v19  ;;  %v571_v24 = vpack.c.bf16 %v70_v23, %v69_v22  ;;  %v741_v25 = vld [vmem:[#allocation3 + $0x8] sm:$0xff]  ;;  %v172_v26 = vld [vmem:[%s795_s1] sm:$0x3] }
  0x2d   :  { %v473_v28 = vadd.f32 -1.0, %v172_v26  ;;  %v471_v37 = vld [vmem:[%s797_s3] ss:$0 sm:$0xff]  ;;  %v247_v57 = vrot.slane %v172_v26, %v751_v34  ;;  %v240_v0 = vrot.slane %v172_v26, %v747_v32 }
  0x2e   :  { %550 = vmatpush3.bf16.msra.mxu0 %v547_v5  ;;  %v472_v42 = vld [vmem:[%s798_s4] ss:$0 sm:$0xff]  ;;  %s676_s4 = smov [#allocation8]  }
  0x2f   :  { %552 = vmatprep.subr.bf16.mxu0 %v551_v8  ;;  %v174_v31 = vmul.f32 1e+30, %v473_v28  ;;  %s458_s5 = sshll.u32 %s676_s4, 4  ;;  %s459_s5 = int_to_ptr.vmem [resolvable:$true] %s458_s5 }
  0x30   :  { %s641_s27 = scalar_lea.vmem %s459_s5, 32  ;;  %p646_p3 = scmp.lt.s32.totalorder %s459_s5, %s459_s5 }
  0x31   :  { %v179_v35 = vrot.slane %v174_v31, %v747_v32  ;;  %v186_v36 = vrot.slane %v174_v31, %v751_v34  ;;  %p642_p2 = scmp.ne.s32.totalorder %s459_s5, %s641_s27  ;;  %p647_p4 = scmp.lt.s32.totalorder %s641_s27, %s641_s27 }
  0x32   :  { %554 = vmatpush3.bf16.msra.mxu0 %v551_v8 }
  0x33   :  { %556 = vmatprep.subr.bf16.mxu0 %v555_v12  ;;  %181 = vbcast.lane.b32.xlu1 %v179_v35, 256  ;;  %p648_p5 = por %p647_p4, %p646_p3 }
  0x35   :  { %p649_p6 = pnand %p648_p5, %p642_p2 }
  0x36   :  { %558 = vmatpush3.bf16.msra.mxu0 %v555_v12 }
  0x37   :  { %560 = vmatprep.subr.bf16.mxu0 %v559_v15  ;;  %188 = vbcast.lane.b32.xlu1 %v186_v36, 256 }
  0x3a   :  { %562 = vmatpush3.bf16.msra.mxu0 %v559_v15 }
  0x3b   :  { %564 = vmatprep.subr.bf16.mxu0 %v563_v18 }
  0x3e   :  { %566 = vmatpush3.bf16.msra.mxu0 %v563_v18 }
  0x3f   :  { %568 = vmatprep.subr.bf16.mxu0 %v567_v21 }
  0x42   :  { %570 = vmatpush3.bf16.msra.mxu0 %v567_v21  ;;  %v674_v21 = vmov 0.0  }
  0x43   :  { %572 = vmatprep.subr.bf16.mxu0 %v571_v24  ;;  %533 = vmatprep.subr.mxu1 %v674_v21 }
  0x44   :  { %534 = vmatpush3.msra.mxu1 %v738_v9  ;;  %535 = vmatprep.mubr.msk.f32.mxu1 %vm675_vm2, %v674_v21 }
  0x45   :  { %538 = vmatprep.subr.mxu1 %v674_v21 }
  0x46   :  { %574 = vmatpush3.bf16.msra.mxu0 %v571_v24 }
  0x49   :  { %531 = vmatmul.mubr.f32.vlgmr.msra.gmra.mrb[0].mxu0 %v741_v25 }
  0xa5   :  { %v182_v49 = vpop.permute.xlu1 %181 }
  0xa9   :  { %v189_v54 = vpop.permute.xlu1 %188 }
 0x11c   :  { %v532_v38 = vpop.f32.mrb[0].mxu0 }
 0x11d   :  { %v144_v39 = vpop.f32.mrb[1].mxu0  ;;  %v150_v40 = vadd.f32 %v532_v38, %v471_v37 }
 0x11e   :  { %v145_v41 = vadd.f32 %v471_v37, %v144_v39 }
 0x120   :  { %587 = vtanh.f32 %v145_v41 }
 0x121   :  { %589 = vtanh.f32 %v150_v40 }
 0x12a   :  { %v588_v43 = vpop.eup %587 }
 0x12b   :  { %v162_v44 = vmul.f32 %v588_v43, %v472_v42  ;;  %v590_v45 = vpop.eup %589 }
 0x12c   :  { %v163_v46 = vmul.f32 %v590_v45, %v472_v42 }
 0x12d   :  { %164 = vadd.xlane.f32.xlu0 %v162_v44 }
 0x131   :  { %166 = vadd.xlane.f32.xlu0 %v163_v46 }
 0x1ba   :  { %v165_v50 = vpop.xlane.xlu0 %164 }
 0x1bb   :  { %v170_v51 = vadd.f32 %v169_v48, %v165_v50 }
 0x1bd   :  { %v192_v52 = vadd.f32 %v182_v49, %v170_v51 }
 0x1be   :  { %v167_v53 = vpop.xlane.xlu0 %166 }
 0x1bf   :  { %v171_v55 = vadd.f32 %v169_v48, %v167_v53  ;;  %197 = vperm.xlu0 %585, %v192_v52  }
 0x1c1   :  { %v193_v56 = vadd.f32 %v189_v54, %v171_v55 }
 0x1c3   :  { %200 = vperm.xlu1 %586, %v193_v56   ;;  %249 = vbcast.lane.b32.xlu0 %v247_v57, 256 }
 0x23e   :  { %v198_v58 = vpop.permute.xlu0 %197 }
 0x23f   :  { %v207_v60 = vrot.slane %v198_v58, %v749_v33 }
 0x242   :  { %v201_v59 = vpop.permute.xlu1 %200  ;;  %v250_v13 = vpop.permute.xlu0 %249 }
 0x243   :  { %v211_v61 = vrot.slane %v201_v59, %v749_v33 }
 0x245   :  { %v213_v62 = vsel %vm212_vm0, %v211_v61, %v207_v60 }
 0x246   :  { %v216_v63 = vsel %vm215_vm1, %v213_v62, -inf }
 0x247   :  { %217 = vmax.xlane.f32.xlu1 %v216_v63 }
 0x258   :  { %242 = vbcast.lane.b32.xlu1 %v240_v0, 256 }
 0x2d4   :  { %v218_v1 = vpop.xlane.xlu1 %217 }
 0x2d5   :  { %v223_v2 = vrot.slane %v218_v1, %v747_v32  ;;  %v227_v3 = vrot.slane %v218_v1, %v751_v34 }
 0x2d7   :  { %v230_v4 = vsub.f32 %v192_v52, %v223_v2  ;;  %v231_v5 = vsub.f32 %v193_v56, %v227_v3 }
 0x2d8   :  { %v243_v8 = vpop.permute.xlu1 %242 }
 0x2d9   :  { %v232_v6 = vmul.f32 1.442695, %v230_v4  ;;  %v234_v7 = vmul.f32 1.442695, %v231_v5 }
 0x2db   :  { %591 = vpow2.f32 %v232_v6 }
 0x2dc   :  { %593 = vpow2.f32 %v234_v7 }
 0x2e5   :  { %v592_v10 = vpop.eup %591 }
 0x2e6   :  { %v253_v11 = vmul.f32 %v592_v10, %v243_v8  ;;  %v594_v12 = vpop.eup %593 }
 0x2e7   :  { %v254_v14 = vmul.f32 %v594_v12, %v250_v13 }
 0x2e8   :  { %258 = vperm.xlu0 %585, %v253_v11  }
 0x2ec   :  { %261 = vperm.xlu0 %585, %v254_v14  }
 0x367   :  { %v259_v15 = vpop.permute.xlu0 %258 }
 0x368   :  { %v266_v17 = vrot.slane %v259_v15, %v749_v33 }
 0x36b   :  { %v262_v16 = vpop.permute.xlu0 %261 }
 0x36c   :  { %v270_v18 = vrot.slane %v262_v16, %v749_v33 }
 0x36e   :  { %v271_v19 = vsel %vm212_vm0, %v270_v18, %v266_v17 }
 0x36f   :  { %v273_v20 = vsel %vm215_vm1, %v271_v19, 0.0 }
 0x370   :  { %274 = vadd.xlane.f32.xlu0 %v273_v20 }
 0x3fd   :  { %v275_v22 = vpop.xlane.xlu0 %274 }
 0x3fe   :  { %595 = vrcp.f32 %v275_v22 }
 0x408   :  { %v596_v23 = vpop.eup %595 }
 0x409   :  { %v281_v24 = vrot.slane %v596_v23, %v747_v32  ;;  %v285_v27 = vrot.slane %v596_v23, %v751_v34 }
 0x40b   :  { %v288_v26 = vmul.f32 %v281_v24, %v253_v11  ;;  %v289_v28 = vmul.f32 %v285_v27, %v254_v14 }
 0x40d   :  { %292 = vperm.xlu1 %586, %v288_v26  }
 0x411   :  { %373 = vperm.xlu1 %586, %v289_v28  }
 0x48c   :  { %v293_v29 = vpop.permute.xlu1 %292 }
 0x48d   :  { %v297_v30 = vrot.slane %v293_v29, %v749_v33 }
 0x48f   :  { %536 = vmatmul.mubr.msk.f32.vlgmr.msra.gmra.mrb[0].mxu1 %vm298_vm3, %v297_v30 }
 0x490   :  { %539 = vmatpush3.msra.mxu1 %v741_v25  ;;  %v374_v9 = vpop.permute.xlu1 %373  ;;  %540 = vmatprep.mubr.msk.f32.mxu1 %vm675_vm2, %v674_v21 }
 0x491   :  { %v378_v31 = vrot.slane %v374_v9, %v749_v33 }
 0x493   :  { %541 = vmatmul.mubr.msk.f32.vlgmr.msra.gmra.mrb[2].mxu1 %vm298_vm3, %v378_v31 }
 0x562   :  { %v367_v32 = vpop.f32.mrb[0].mxu1 }
 0x563   :  { %451 = vst [vmem:[#allocation8] sm:$0x1] %v367_v32  ;;  %v537_v34 = vpop.f32.mrb[1].mxu1 }
 0x566   :  { %v447_v35 = vpop.f32.mrb[2].mxu1 }
 0x567   :  { %452 = vst [vmem:[#allocation8 + $0x1] sm:$0x1] %v447_v35  ;;  %v542_v36 = vpop.f32.mrb[3].mxu1 }
 0x568   :  { %652 = shalt.err (!%p649_p6)
}
 0x569   :  { %s653_s30 = scalar_lea.hbm %s800_s6, 32 }
 0x56a   :  { %p654_p7 = scmp.ne.s32.totalorder %s800_s6, %s653_s30  ;;  %p657_p8 = scmp.lt.u32.totalorder %s653_s30, %s800_s6 }
 0x56c   :  { %p659_p9 = pnand %p657_p8, %p654_p7 }
 0x56e   :  { %662 = shalt.err (!%p659_p9)
}
 0x56f   :  { %s677_s11 = smov 16   ;;  %s678_s12 = smov 1  }
 0x570   :  { %464 = dma.vmem_to_hbm [thread:$0]  %s459_s5, 32, %s800_s6, [#allocation5], %s677_s11, %s677_s11, %s678_s12  }
 0x571   :  { %667 = dma.done.wait [#allocation5], 32  }
 0x572   :  { %668 = vsyncadd [#allocation5], 4294967264 }
 0x573   :  { %468 = vsyncpa [#allocation4], 1 }
 0x574   :  { %469 = vsyncpa [#allocation7], 1 }
 0x575   :  { %470 = vsyncpa [#allocation5], 1 }

</bundles_post_ra>
